<compile_context>
chip_gen: v7x
topology: tpu7x:2x2x1
jax: 0.10.0
libtpu: 0.0.40
codegen_flags: <defaults>
</compile_context>

<pallas_src>
import functools

import jax
import jax.numpy as jnp
from jax import lax
from jax.experimental import pallas as pl
from jax.experimental.pallas import tpu as pltpu


def _embed_kernel(words_ref, chars_ref, tt_ref, pos_ref, ttab_ref,
                  gamma_ref, beta_ref, out_ref, *, eps, dw, dc, num_types):
    """Fused add-embeddings + LayerNorm for one (bblk, S) block.

    words_ref : (bblk, S, Dw)  gathered word embeddings (native table dtype)
    chars_ref : (bblk, S, Dc)  char embeddings
    tt_ref    : (bblk, S, 1)   token-type ids, int32
    pos_ref   : (S, E)         pre-sliced absolute-position rows
    ttab_ref  : (T, E)         token-type table
    gamma/beta: (1, E)         LayerNorm affine (f32)
    out_ref   : (bblk, S, E)
    """
    e = float(dw + dc)

    # Upcast on the VPU; LN math accumulates in f32 (eps=1e-12 is below bf16 resolution).
    w = words_ref[...].astype(jnp.float32)            # (bblk, S, Dw)
    c = chars_ref[...].astype(jnp.float32)            # (bblk, S, Dc)

    pos = pos_ref[...].astype(jnp.float32)            # (S, E)
    pos_w = pos[:, :dw][None]                         # (1, S, Dw)
    pos_c = pos[:, dw:][None]                         # (1, S, Dc)

    ttab = ttab_ref[...].astype(jnp.float32)          # (T, E)
    tt = tt_ref[...]                                  # (bblk, S, 1) int32

    def tte_select(rows):
        # rows: (T, width).  Chained select on the VPU; rows hoisted (no per-iter broadcasts,
        # no zeros_like init, T-1 selects instead of T compare+mul+add passes).
        if num_types == 1:
            return rows[0:1, :][None]                 # (1, 1, width)
        sel = jnp.where(tt == 0, rows[0:1, :][None], rows[num_types - 1:num_types, :][None])
        for t in range(1, num_types - 1):
            sel = jnp.where(tt == t, rows[t:t + 1, :][None], sel)
        return sel                                    # (bblk, S, width)

    # The two lane halves of x = concat([words, chars], -1) + token_type + position.
    xw = w + pos_w + tte_select(ttab[:, :dw])         # (bblk, S, Dw)
    xc = c + pos_c + tte_select(ttab[:, dw:])         # (bblk, S, Dc)

    # LayerNorm over the full embedding dim, computed from the two halves
    # (the concatenated row is never materialized).
    s1 = jnp.sum(xw, axis=-1, keepdims=True) + jnp.sum(xc, axis=-1, keepdims=True)
    mean = s1 * (1.0 / e)
    dxw = xw - mean
    dxc = xc - mean
    s2 = jnp.sum(dxw * dxw, axis=-1, keepdims=True) + jnp.sum(dxc * dxc, axis=-1, keepdims=True)
    inv = lax.rsqrt(s2 * (1.0 / e) + eps)

    gamma = gamma_ref[...].astype(jnp.float32)        # (1, E)
    beta = beta_ref[...].astype(jnp.float32)
    gw = gamma[:, :dw][None]                          # (1, 1, Dw)
    gc = gamma[:, dw:][None]
    bw = beta[:, :dw][None]
    bc = beta[:, dw:][None]

    # Dropout is identity in eval mode.
    # TODO(synk): training-mode dropout mask is not applied (inference only).
    out_ref[:, :, :dw] = (dxw * inv * gw + bw).astype(out_ref.dtype)
    out_ref[:, :, dw:] = (dxc * inv * gc + bc).astype(out_ref.dtype)


def _pick_block_batch(batch, seq, dw, dc, e, words_bytes, chars_bytes, out_bytes,
                      vmem_budget_bytes=8 << 20):
    """Largest divisor of `batch` whose double-buffered step fits a conservative VMEM budget.

    Keeps grid >= 2 whenever batch >= 2 so both v7x TensorCores get work; on single-TC
    v5e/v6e the extra grid step costs ~0.35 us, negligible for this mem-bound kernel.
    """
    per_row = 2 * seq * (dw * words_bytes + dc * chars_bytes + 4 + e * out_bytes)
    cap = max(1, vmem_budget_bytes // max(per_row, 1))
    cap = min(cap, max(1, batch // 2))
    best = 1
    for cand in range(1, batch + 1):
        if batch % cand == 0 and cand <= cap:
            best = cand
    return best


def albert_word_embeddings(input_ids, chars_embeds, word_tab, pos_tab, type_tab,
                           gamma, beta, *, eps=1e-12, token_type_ids=None,
                           position_ids=None, past_key_values_length=0,
                           block_batch=None, out_dtype=jnp.float32):
    B, S = input_ids.shape
    Dc = chars_embeds.shape[-1]
    V, Dw = word_tab.shape
    P, E = pos_tab.shape
    T = type_tab.shape[0]
    assert Dw + Dc == E, "word_embedding_size + char_dim must equal embedding_size"

    # Word-embedding gather done by XLA (native gather / SparseCore path on v6e/v7x):
    # one contiguous (B, S, Dw) stream in the table's native dtype — no vocab-sized data
    # and no per-token DMAs ever touch the kernel.
    words = jnp.take(word_tab, input_ids.astype(jnp.int32), axis=0)      # (B, S, Dw)

    # Absolute position rows. Default position_ids is an arange -> contiguous slice.
    if position_ids is None:
        pos_rows = lax.dynamic_slice_in_dim(pos_tab, past_key_values_length, S, axis=0)
    else:
        pid = jnp.asarray(position_ids, jnp.int32).reshape(-1, jnp.shape(position_ids)[-1])[0]
        pos_rows = jnp.take(pos_tab, pid, axis=0)                        # (S, E) tiny XLA gather
        # TODO(synk): per-batch-element position_ids are not supported by the fused kernel.

    if token_type_ids is None:
        token_type_ids = jnp.zeros((B, S), jnp.int32)
    tt_i = jnp.asarray(token_type_ids).astype(jnp.int32).reshape(B, S, 1)

    gamma2 = jnp.asarray(gamma, jnp.float32).reshape(1, E)
    beta2 = jnp.asarray(beta, jnp.float32).reshape(1, E)

    wb = jnp.dtype(words.dtype).itemsize
    cb = jnp.dtype(chars_embeds.dtype).itemsize
    ob = jnp.dtype(out_dtype).itemsize

    if block_batch is None:
        block_batch = _pick_block_batch(B, S, Dw, Dc, E, wb, cb, ob)
    assert B % block_batch == 0
    grid = (B // block_batch,)

    kernel = functools.partial(_embed_kernel, eps=float(eps), dw=Dw, dc=Dc, num_types=T)

    cost = pl.CostEstimate(
        flops=int(B * S * E * (8 + T)),
        transcendentals=int(B * S),
        bytes_accessed=int(B * S * Dw * wb + B * S * Dc * cb + 4 * B * S
                           + 4 * S * E + 4 * T * E + 8 * E + B * S * E * ob),
    )

    return pl.pallas_call(
        kernel,
        out_shape=jax.ShapeDtypeStruct((B, S, E), out_dtype),
        grid_spec=pltpu.PrefetchScalarGridSpec(
            num_scalar_prefetch=0,
            grid=grid,
            in_specs=[
                pl.BlockSpec((block_batch, S, Dw), lambda b: (b, 0, 0)),   # gathered word embeds
                pl.BlockSpec((block_batch, S, Dc), lambda b: (b, 0, 0)),   # char embeddings
                pl.BlockSpec((block_batch, S, 1), lambda b: (b, 0, 0)),    # token-type ids (int32)
                pl.BlockSpec((S, E), lambda b: (0, 0)),                    # position rows
                pl.BlockSpec((T, E), lambda b: (0, 0)),                    # token-type table
                pl.BlockSpec((1, E), lambda b: (0, 0)),                    # LN gamma
                pl.BlockSpec((1, E), lambda b: (0, 0)),                    # LN beta
            ],
            out_specs=pl.BlockSpec((block_batch, S, E), lambda b: (b, 0, 0)),
        ),
        compiler_params=pltpu.CompilerParams(dimension_semantics=("parallel",)),
        cost_estimate=cost,
    )(words, chars_embeds, tt_i, pos_rows, type_tab, gamma2, beta2)


def _reference(input_ids, chars_embeds, word_tab, pos_tab, type_tab, gamma, beta, eps,
               token_type_ids=None, past_key_values_length=0):
    B, S = input_ids.shape
    if token_type_ids is None:
        token_type_ids = jnp.zeros((B, S), jnp.int32)
    pos = pos_tab[past_key_values_length:past_key_values_length + S]
    x = jnp.concatenate([word_tab[input_ids], chars_embeds], axis=-1)
    x = x + type_tab[token_type_ids] + pos[None, :, :]
    mean = x.mean(-1, keepdims=True)
    var = ((x - mean) ** 2).mean(-1, keepdims=True)
    return (x - mean) / jnp.sqrt(var + eps) * gamma + beta


if __name__ == "__main__":
    # Synthetic ALBERT-style config: word_embedding_size + char_dim == embedding_size.
    vocab_size = 32
    word_embedding_size = 16
    embedding_size = 32
    char_dim = embedding_size - word_embedding_size
    max_position_embeddings = 16
    type_vocab_size = 2
    pad_token_id = 0
    layer_norm_eps = 1e-12
    B, S = 2, 8

    key = jax.random.PRNGKey(0)
    k1, k2, k3, k4, k5, k6, k7 = jax.random.split(key, 7)

    word_tab = 0.02 * jax.random.normal(k1, (vocab_size, word_embedding_size), jnp.float32)
    word_tab = word_tab.at[pad_token_id].set(0.0)   # nn.Embedding padding_idx row is zero
    pos_tab = 0.02 * jax.random.normal(k2, (max_position_embeddings, embedding_size), jnp.float32)
    type_tab = 0.02 * jax.random.normal(k3, (type_vocab_size, embedding_size), jnp.float32)
    gamma = 1.0 + 0.1 * jax.random.normal(k6, (embedding_size,), jnp.float32)
    beta = 0.1 * jax.random.normal(k7, (embedding_size,), jnp.float32)

    input_ids = jax.random.randint(k4, (B, S), 0, vocab_size, dtype=jnp.int32)
    chars_embeds = 0.1 * jax.random.normal(k5, (B, S, char_dim), jnp.float32)

    # Case 1: module defaults (token_type_ids=None, position_ids=None).
    out = albert_word_embeddings(input_ids, chars_embeds, word_tab, pos_tab,
                                 type_tab, gamma, beta, eps=layer_norm_eps)
    out = jax.block_until_ready(out)
    ref = _reference(input_ids, chars_embeds, word_tab, pos_tab, type_tab,
                     gamma, beta, layer_norm_eps)
    assert out.shape == (B, S, embedding_size)
    assert jnp.allclose(out, ref, atol=1e-5, rtol=1e-5), \
        f"case1 max err {jnp.max(jnp.abs(out - ref))}"

    # Case 2: explicit token_type_ids and a past-key-values offset.
    token_type_ids = jnp.tile(jnp.arange(S, dtype=jnp.int32) % type_vocab_size, (B, 1))
    past = 4
    out2 = albert_word_embeddings(input_ids, chars_embeds, word_tab, pos_tab,
                                  type_tab, gamma, beta, eps=layer_norm_eps,
                                  token_type_ids=token_type_ids,
                                  past_key_values_length=past)
    out2 = jax.block_until_ready(out2)
    ref2 = _reference(input_ids, chars_embeds, word_tab, pos_tab, type_tab,
                      gamma, beta, layer_norm_eps,
                      token_type_ids=token_type_ids, past_key_values_length=past)
    assert jnp.allclose(out2, ref2, atol=1e-5, rtol=1e-5), \
        f"case2 max err {jnp.max(jnp.abs(out2 - ref2))}"

    print("KERNEL_OK")
</pallas_src>

<mosaic_0001>
module attributes {stable_mosaic.version = 11 : i64} {
  func.func @_embed_kernel(%arg0: i32, %arg1: memref<1x8x16xf32, #tpu.memory_space<vmem>>, %arg2: memref<1x8x16xf32, #tpu.memory_space<vmem>>, %arg3: memref<1x8x1xi32, #tpu.memory_space<vmem>>, %arg4: memref<8x32xf32, #tpu.memory_space<vmem>>, %arg5: memref<2x32xf32, #tpu.memory_space<vmem>>, %arg6: memref<1x32xf32, #tpu.memory_space<vmem>>, %arg7: memref<1x32xf32, #tpu.memory_space<vmem>>, %arg8: memref<1x8x32xf32, #tpu.memory_space<vmem>>) attributes {dimension_semantics = [#tpu.dimension_semantics<parallel>], iteration_bounds = array<i64: 2>, scalar_prefetch = 0 : i64, scratch_operands = 0 : i64, tpu.core_type = #tpu.core_type<tc>, window_params = [{transform_indices = @transform_0, window_bounds = array<i64: 1, 8, 16>}, {transform_indices = @transform_1, window_bounds = array<i64: 1, 8, 16>}, {transform_indices = @transform_2, window_bounds = array<i64: 1, 8, 1>}, {pipeline_mode = #tpu.pipeline_mode<synchronous>, transform_indices = @transform_3, window_bounds = array<i64: 8, 32>}, {pipeline_mode = #tpu.pipeline_mode<synchronous>, transform_indices = @transform_4, window_bounds = array<i64: 2, 32>}, {pipeline_mode = #tpu.pipeline_mode<synchronous>, transform_indices = @transform_5, window_bounds = array<i64: 1, 32>}, {pipeline_mode = #tpu.pipeline_mode<synchronous>, transform_indices = @transform_6, window_bounds = array<i64: 1, 32>}, {transform_indices = @transform_7, window_bounds = array<i64: 1, 8, 32>}]} {
    %c0 = arith.constant 0 : index
    %c0_0 = arith.constant 0 : index
    %c0_1 = arith.constant 0 : index
    %0 = vector.load %arg1[%c0, %c0_0, %c0_1] : memref<1x8x16xf32, #tpu.memory_space<vmem>>, vector<1x8x16xf32>
    %c0_2 = arith.constant 0 : index
    %c0_3 = arith.constant 0 : index
    %c0_4 = arith.constant 0 : index
    %1 = vector.load %arg2[%c0_2, %c0_3, %c0_4] : memref<1x8x16xf32, #tpu.memory_space<vmem>>, vector<1x8x16xf32>
    %c0_5 = arith.constant 0 : index
    %c0_6 = arith.constant 0 : index
    %2 = vector.load %arg4[%c0_5, %c0_6] : memref<8x32xf32, #tpu.memory_space<vmem>>, vector<8x32xf32>
    %3 = vector.extract_strided_slice %2 {offsets = [0, 0], sizes = [8, 16], strides = [1, 1]} : vector<8x32xf32> to vector<8x16xf32>
    %4 = vector.shape_cast %3 : vector<8x16xf32> to vector<1x8x16xf32>
    %5 = vector.extract_strided_slice %2 {offsets = [0, 16], sizes = [8, 16], strides = [1, 1]} : vector<8x32xf32> to vector<8x16xf32>
    %6 = vector.shape_cast %5 : vector<8x16xf32> to vector<1x8x16xf32>
    %c0_7 = arith.constant 0 : index
    %c0_8 = arith.constant 0 : index
    %7 = vector.load %arg5[%c0_7, %c0_8] : memref<2x32xf32, #tpu.memory_space<vmem>>, vector<2x32xf32>
    %c0_9 = arith.constant 0 : index
    %c0_10 = arith.constant 0 : index
    %c0_11 = arith.constant 0 : index
    %8 = vector.load %arg3[%c0_9, %c0_10, %c0_11] : memref<1x8x1xi32, #tpu.memory_space<vmem>>, vector<1x8x1xi32>
    %9 = arith.addf %0, %4 : vector<1x8x16xf32>
    %10 = vector.extract_strided_slice %7 {offsets = [0, 0], sizes = [2, 16], strides = [1, 1]} : vector<2x32xf32> to vector<2x16xf32>
    %c0_i32 = arith.constant 0 : i32
    %11 = vector.broadcast %c0_i32 : i32 to vector<1x8x1xi32>
    %12 = arith.cmpi eq, %8, %11 : vector<1x8x1xi32>
    %13 = vector.extract_strided_slice %10 {offsets = [0, 0], sizes = [1, 16], strides = [1, 1]} : vector<2x16xf32> to vector<1x16xf32>
    %14 = vector.shape_cast %13 : vector<1x16xf32> to vector<1x1x16xf32>
    %15 = vector.extract_strided_slice %10 {offsets = [1, 0], sizes = [1, 16], strides = [1, 1]} : vector<2x16xf32> to vector<1x16xf32>
    %16 = vector.shape_cast %15 : vector<1x16xf32> to vector<1x1x16xf32>
    %17 = vector.shape_cast %12 : vector<1x8x1xi1> to vector<1x8x1xi1>
    %18 = vector.broadcast %17 : vector<1x8x1xi1> to vector<1x8x16xi1>
    %19 = vector.shape_cast %14 : vector<1x1x16xf32> to vector<1x1x16xf32>
    %20 = vector.broadcast %19 : vector<1x1x16xf32> to vector<1x8x16xf32>
    %21 = vector.shape_cast %16 : vector<1x1x16xf32> to vector<1x1x16xf32>
    %22 = vector.broadcast %21 : vector<1x1x16xf32> to vector<1x8x16xf32>
    %23 = arith.select %18, %20, %22 : vector<1x8x16xi1>, vector<1x8x16xf32>
    %24 = arith.addf %9, %23 : vector<1x8x16xf32>
    %25 = arith.addf %1, %6 : vector<1x8x16xf32>
    %26 = vector.extract_strided_slice %7 {offsets = [0, 16], sizes = [2, 16], strides = [1, 1]} : vector<2x32xf32> to vector<2x16xf32>
    %c0_i32_12 = arith.constant 0 : i32
    %27 = vector.broadcast %c0_i32_12 : i32 to vector<1x8x1xi32>
    %28 = arith.cmpi eq, %8, %27 : vector<1x8x1xi32>
    %29 = vector.extract_strided_slice %26 {offsets = [0, 0], sizes = [1, 16], strides = [1, 1]} : vector<2x16xf32> to vector<1x16xf32>
    %30 = vector.shape_cast %29 : vector<1x16xf32> to vector<1x1x16xf32>
    %31 = vector.extract_strided_slice %26 {offsets = [1, 0], sizes = [1, 16], strides = [1, 1]} : vector<2x16xf32> to vector<1x16xf32>
    %32 = vector.shape_cast %31 : vector<1x16xf32> to vector<1x1x16xf32>
    %33 = vector.shape_cast %28 : vector<1x8x1xi1> to vector<1x8x1xi1>
    %34 = vector.broadcast %33 : vector<1x8x1xi1> to vector<1x8x16xi1>
    %35 = vector.shape_cast %30 : vector<1x1x16xf32> to vector<1x1x16xf32>
    %36 = vector.broadcast %35 : vector<1x1x16xf32> to vector<1x8x16xf32>
    %37 = vector.shape_cast %32 : vector<1x1x16xf32> to vector<1x1x16xf32>
    %38 = vector.broadcast %37 : vector<1x1x16xf32> to vector<1x8x16xf32>
    %39 = arith.select %34, %36, %38 : vector<1x8x16xi1>, vector<1x8x16xf32>
    %40 = arith.addf %25, %39 : vector<1x8x16xf32>
    %cst = arith.constant dense<0.000000e+00> : vector<1x8xf32>
    %41 = vector.multi_reduction <add>, %24, %cst [2] : vector<1x8x16xf32> to vector<1x8xf32>
    %42 = vector.shape_cast %41 : vector<1x8xf32> to vector<1x8x1xf32>
    %cst_13 = arith.constant dense<0.000000e+00> : vector<1x8xf32>
    %43 = vector.multi_reduction <add>, %40, %cst_13 [2] : vector<1x8x16xf32> to vector<1x8xf32>
    %44 = vector.shape_cast %43 : vector<1x8xf32> to vector<1x8x1xf32>
    %45 = arith.addf %42, %44 : vector<1x8x1xf32>
    %cst_14 = arith.constant 3.125000e-02 : f32
    %46 = vector.broadcast %cst_14 : f32 to vector<1x8x1xf32>
    %47 = arith.mulf %45, %46 : vector<1x8x1xf32>
    %48 = vector.broadcast %47 : vector<1x8x1xf32> to vector<1x8x16xf32>
    %49 = arith.subf %24, %48 : vector<1x8x16xf32>
    %50 = vector.broadcast %47 : vector<1x8x1xf32> to vector<1x8x16xf32>
    %51 = arith.subf %40, %50 : vector<1x8x16xf32>
    %52 = arith.mulf %49, %49 : vector<1x8x16xf32>
    %cst_15 = arith.constant dense<0.000000e+00> : vector<1x8xf32>
    %53 = vector.multi_reduction <add>, %52, %cst_15 [2] : vector<1x8x16xf32> to vector<1x8xf32>
    %54 = vector.shape_cast %53 : vector<1x8xf32> to vector<1x8x1xf32>
    %55 = arith.mulf %51, %51 : vector<1x8x16xf32>
    %cst_16 = arith.constant dense<0.000000e+00> : vector<1x8xf32>
    %56 = vector.multi_reduction <add>, %55, %cst_16 [2] : vector<1x8x16xf32> to vector<1x8xf32>
    %57 = vector.shape_cast %56 : vector<1x8xf32> to vector<1x8x1xf32>
    %58 = arith.addf %54, %57 : vector<1x8x1xf32>
    %cst_17 = arith.constant 3.125000e-02 : f32
    %59 = vector.broadcast %cst_17 : f32 to vector<1x8x1xf32>
    %60 = arith.mulf %58, %59 : vector<1x8x1xf32>
    %cst_18 = arith.constant 9.99999996E-13 : f32
    %61 = vector.broadcast %cst_18 : f32 to vector<1x8x1xf32>
    %62 = arith.addf %60, %61 : vector<1x8x1xf32>
    %63 = math.rsqrt %62 : vector<1x8x1xf32>
    %c0_19 = arith.constant 0 : index
    %c0_20 = arith.constant 0 : index
    %64 = vector.load %arg6[%c0_19, %c0_20] : memref<1x32xf32, #tpu.memory_space<vmem>>, vector<1x32xf32>
    %c0_21 = arith.constant 0 : index
    %c0_22 = arith.constant 0 : index
    %65 = vector.load %arg7[%c0_21, %c0_22] : memref<1x32xf32, #tpu.memory_space<vmem>>, vector<1x32xf32>
    %66 = vector.extract_strided_slice %64 {offsets = [0, 0], sizes = [1, 16], strides = [1, 1]} : vector<1x32xf32> to vector<1x16xf32>
    %67 = vector.shape_cast %66 : vector<1x16xf32> to vector<1x1x16xf32>
    %68 = vector.extract_strided_slice %64 {offsets = [0, 16], sizes = [1, 16], strides = [1, 1]} : vector<1x32xf32> to vector<1x16xf32>
    %69 = vector.shape_cast %68 : vector<1x16xf32> to vector<1x1x16xf32>
    %70 = vector.extract_strided_slice %65 {offsets = [0, 0], sizes = [1, 16], strides = [1, 1]} : vector<1x32xf32> to vector<1x16xf32>
    %71 = vector.shape_cast %70 : vector<1x16xf32> to vector<1x1x16xf32>
    %72 = vector.extract_strided_slice %65 {offsets = [0, 16], sizes = [1, 16], strides = [1, 1]} : vector<1x32xf32> to vector<1x16xf32>
    %73 = vector.shape_cast %72 : vector<1x16xf32> to vector<1x1x16xf32>
    %74 = vector.broadcast %63 : vector<1x8x1xf32> to vector<1x8x16xf32>
    %75 = arith.mulf %49, %74 : vector<1x8x16xf32>
    %76 = vector.broadcast %67 : vector<1x1x16xf32> to vector<1x8x16xf32>
    %77 = arith.mulf %75, %76 : vector<1x8x16xf32>
    %78 = vector.broadcast %71 : vector<1x1x16xf32> to vector<1x8x16xf32>
    %79 = arith.addf %77, %78 : vector<1x8x16xf32>
    %c0_23 = arith.constant 0 : index
    %c0_24 = arith.constant 0 : index
    %c0_25 = arith.constant 0 : index
    %80 = vector.load %arg8[%c0_23, %c0_24, %c0_25] : memref<1x8x32xf32, #tpu.memory_space<vmem>>, vector<1x8x16xf32>
    tpu.vector_store %arg8[%c0_23, %c0_24, %c0_25], %79 {strides = array<i32>} : memref<1x8x32xf32, #tpu.memory_space<vmem>>, vector<1x8x16xf32>,
    %81 = vector.broadcast %63 : vector<1x8x1xf32> to vector<1x8x16xf32>
    %82 = arith.mulf %51, %81 : vector<1x8x16xf32>
    %83 = vector.broadcast %69 : vector<1x1x16xf32> to vector<1x8x16xf32>
    %84 = arith.mulf %82, %83 : vector<1x8x16xf32>
    %85 = vector.broadcast %73 : vector<1x1x16xf32> to vector<1x8x16xf32>
    %86 = arith.addf %84, %85 : vector<1x8x16xf32>
    %c0_26 = arith.constant 0 : index
    %c0_27 = arith.constant 0 : index
    %c16 = arith.constant 16 : index
    %87 = vector.load %arg8[%c0_26, %c0_27, %c16] : memref<1x8x32xf32, #tpu.memory_space<vmem>>, vector<1x8x16xf32>
    tpu.vector_store %arg8[%c0_26, %c0_27, %c16], %86 {strides = array<i32>} : memref<1x8x32xf32, #tpu.memory_space<vmem>>, vector<1x8x16xf32>,
    return
  }
  func.func @transform_0(%arg0: i32) -> (i32, i32, i32) {
    %c0_i32 = arith.constant 0 : i32
    %c0_i32_0 = arith.constant 0 : i32
    %c0_i32_1 = arith.constant 0 : i32
    return %arg0, %c0_i32, %c0_i32_0 : i32, i32, i32
  }
  func.func @transform_1(%arg0: i32) -> (i32, i32, i32) {
    %c0_i32 = arith.constant 0 : i32
    %c0_i32_0 = arith.constant 0 : i32
    %c0_i32_1 = arith.constant 0 : i32
    return %arg0, %c0_i32, %c0_i32_0 : i32, i32, i32
  }
  func.func @transform_2(%arg0: i32) -> (i32, i32, i32) {
    %c0_i32 = arith.constant 0 : i32
    %c0_i32_0 = arith.constant 0 : i32
    %c0_i32_1 = arith.constant 0 : i32
    return %arg0, %c0_i32, %c0_i32_0 : i32, i32, i32
  }
  func.func @transform_3(%arg0: i32) -> (i32, i32) {
    %c0_i32 = arith.constant 0 : i32
    %c0_i32_0 = arith.constant 0 : i32
    %c0_i32_1 = arith.constant 0 : i32
    return %c0_i32, %c0_i32_0 : i32, i32
  }
  func.func @transform_4(%arg0: i32) -> (i32, i32) {
    %c0_i32 = arith.constant 0 : i32
    %c0_i32_0 = arith.constant 0 : i32
    %c0_i32_1 = arith.constant 0 : i32
    return %c0_i32, %c0_i32_0 : i32, i32
  }
  func.func @transform_5(%arg0: i32) -> (i32, i32) {
    %c0_i32 = arith.constant 0 : i32
    %c0_i32_0 = arith.constant 0 : i32
    %c0_i32_1 = arith.constant 0 : i32
    return %c0_i32, %c0_i32_0 : i32, i32
  }
  func.func @transform_6(%arg0: i32) -> (i32, i32) {
    %c0_i32 = arith.constant 0 : i32
    %c0_i32_0 = arith.constant 0 : i32
    %c0_i32_1 = arith.constant 0 : i32
    return %c0_i32, %c0_i32_0 : i32, i32
  }
  func.func @transform_7(%arg0: i32) -> (i32, i32, i32) {
    %c0_i32 = arith.constant 0 : i32
    %c0_i32_0 = arith.constant 0 : i32
    %c0_i32_1 = arith.constant 0 : i32
    return %arg0, %c0_i32, %c0_i32_0 : i32, i32, i32
  }
}

</mosaic_0001>

<bundles_post_ra>
// kernel: tpu_custom_call.1
= control target key start
LH: loop header
LB: loop body
LE: loop exit
PB: predicated region body
PF: predicated region fallthrough
CT: control target
= control target key end

     0   :  { %12 = vsyncpa [#allocation3], 0  ;;  %s932_s0 = inlined_call_operand.vmem [shape: f32[2,8,16], index: 0, kind: input, shape index: {}]   ;;  %s933_s1 = inlined_call_operand.hbm [shape: f32[2,8,16], index: 1, kind: input, shape index: {}]   ;;  %s934_s2 = inlined_call_operand.vmem [shape: s32[2,8,1], index: 2, kind: input, shape index: {}]   ;;  %s935_s3 = inlined_call_operand.vmem [shape: f32[8,32], index: 3, kind: input, shape index: {}]   ;;  %s936_s4 = inlined_call_operand.vmem [shape: f32[2,32], index: 4, kind: input, shape index: {}]   ;;  %s937_s5 = inlined_call_operand.vmem [shape: f32[1,32], index: 5, kind: input, shape index: {}]   ;;  %s938_s6 = inlined_call_operand.vmem [shape: f32[1,32], index: 6, kind: input, shape index: {}]   ;;  %s939_s7 = inlined_call_operand.hbm [shape: f32[2,8,32], index: 7, kind: output, shape index: {}]  }
   0x1   :  { %14 = vsyncpa [#allocation3 + $0x1], 0 }
   0x2   :  { %15 = vsyncpa [#allocation4], 0 }
   0x3   :  { %17 = vsyncpa [#allocation4 + $0x1], 0  ;;  %s735_s24 = smov 0   ;;  %s737_s25 = smov 0  }
   0x4   :  { %s739_s26 = smov 0   ;;  %s741_s27 = smov 0  }
   0x5 LB: > { %s756_s28 = sadd.s32 4294967295, %s688_s27   ;;  %s524_s29 = sadd.s32 4294967294, %s688_s27   ;;  %s688_s27 = sphi %s741_s27, %s954_s27   ;;  %s684_s26 = sphi %s739_s26, %s953_s26   ;;  %s680_s25 = sphi %s737_s25, %s952_s25   ;;  %s676_s24 = sphi %s735_s24, %s951_s24  }
   0x6   : > { %s760_s30 = sadd.s32 1, %s688_s27   ;;  %s56_s8 = sadd.s32 1, %s684_s26 }
   0x7   : > { %s53_s9 = ssub.s32 %s688_s27, %s760_s30  ;;  %p63_p0 = scmp.ne.s32.totalorder %s684_s26, %s680_s25 }
   0x8   : > { %p54_p1 = scmp.eq.s32.totalorder %s53_s9, 0  ;;  %p64_p2 = scmp.eq.s32.totalorder %s688_s27, 0 }
   0x9   : > { %p69_p3 = scmp.ne.s32.totalorder %s680_s25, %s676_s24  ;;  %p70_p4 = scmp.eq.s32.totalorder %s756_s28, 0 }
   0xa   : > { %s772_s10 = scalar_select %p54_p1, %s684_s26, %s56_s8  }
   0xb   : > { %p774_p5 = por %p64_p2, %p63_p0  ;;  %p778_p6 = por %p70_p4, %p69_p3 }
   0xc   : > { %p203_p7 = scmp.eq.s32.totalorder %s756_s28, 1  ;;  %p209_p8 = scmp.eq.s32.totalorder %s524_s29, 1 }
   0xd   : > { %p552_p10 = scmp.lt.s32.totalorder %s688_s27, 2  ;;  %s248_s15 = sand.u32 1, %s684_s26  }
   0xe   : > { %p785_p11 = por %p203_p7, %p63_p0  ;;  %p789_p12 = por %p209_p8, %p69_p3 }
   0xf   : > { %s528_s16 = sshll.u32 %s688_s27, 7  ;;  %s527_s17 = sshll.u32 %s248_s15, 3 }
  0x10   : > { %s943_s13 = scalar_select %p785_p11, 1, 0 }
  0x11   : > { %s944_s14 = scalar_select %p789_p12, 1, 0 }
  0x12   : > { %s798_s20 = scalar_lea.hbm %s933_s1, %s528_s16  ;;  %s252_s21 = scalar_lea.vmem [#allocation2], %s527_s17 }
  0x13   : > { %s259_s22 = sshll.u32 %s252_s21, 4  ;;  %p802_p13 = pnand %p552_p10, %p774_p5  ;;  %s806_s22 = int_to_ptr.vmem [resolvable:$true] %s259_s22 }
  0x14   : > { %s249_s29 = scalar_lea.sflag [#allocation3], %s248_s15  ;;  %s592_s8 = scalar_lea.hbm %s798_s20, 128 }
  0x15   : > { %p593_p2 = scmp.ne.s32.totalorder %s798_s20, %s592_s8  ;;  %p594_p3 = pneg %p802_p13 }
  0x16   : > { %s597_s16 = scalar_lea.hbm %s933_s1, 256  ;;  %p598_p5 = scmp.lt.u32.totalorder %s798_s20, %s933_s1 }
  0x17   : > { %p595_p4 = pnand %p594_p3, %p593_p2  ;;  %p599_p8 = scmp.lt.u32.totalorder %s597_s16, %s592_s8 }
  0x18   : > { %p601_p9 = scmp.lt.u32.totalorder %s592_s8, %s798_s20 }
  0x19   : > { %p596_p7 = pneg %p595_p4  ;;  %p600_p10 = por %p599_p8, %p598_p5 }
  0x1b   : > { %p602_p0 = por %p601_p9, %p600_p10 }
  0x1d   : > { %p603_p1 = pnand %p602_p0, %p596_p7 }
  0x1f   : > { %606 = shalt.err (!%p603_p1)
}
  0x20   : > { %s607_s15 = scalar_lea.vmem %s806_s22, 128  ;;  %s690_s19 = smov [#allocation2]  }
  0x21   : > { %p608_p2 = scmp.ne.s32.totalorder %s806_s22, %s607_s15  ;;  %s612_s21 = sshll.u32 %s690_s19, 4  ;;  %s613_s21 = int_to_ptr.vmem [resolvable:$false] %s612_s21 }
  0x22   : > { %s614_s9 = scalar_lea.vmem %s613_s21, 256  ;;  %p615_p11 = scmp.lt.s32.totalorder %s806_s22, %s613_s21 }
  0x23   : > { %p610_p4 = pnand %p608_p2, %p594_p3  ;;  %p616_p5 = scmp.lt.s32.totalorder %s614_s9, %s607_s15 }
  0x25   : > { %p611_p12 = pneg %p610_p4  ;;  %p617_p8 = por %p616_p5, %p615_p11 }
  0x27   : > { %p618_p9 = pnand %p617_p8, %p611_p12 }
  0x29   : > { %621 = shalt.err (!%p618_p9)
}
  0x2a   : > { %547 = dma.hbm_to_vmem [thread:$0]  (!%p802_p13), %s798_s20, 128, %s806_s22, %s249_s29  }
  0x2b   : > { %p946_p0 = scmp.lt.s32.totalorder %s688_s27, 3  ;;  %p947_p1 = scmp.ge.s32.totalorder %s688_s27, 1 }
  0x2d   : > { %p272_p3 = pnand %p947_p1, %p946_p0 }
  0x2e   : > { %s840_s8 = sand.u32 (!%p272_p3), 1, %s680_s25  }
  0x2f   : > { %275 = sbr.rel (%p272_p3) target bundleno = 757 (0x2f5), region = 48  ;;  %s530_s11 = sshll.u32 (!%p272_p3), %s840_s8, 3 }
  0x30   : > { %s278_s16 = scalar_lea.sflag (!%p272_p3), [#allocation3], %s840_s8  ;;  %s846_s23 = scalar_lea.vmem (!%p272_p3), [#allocation2], %s530_s11 }
  0x36   : > { %667 = dma.done.wait (%p778_p6), %s278_s16, 128  }
  0x37   : > { %669 = vsyncadd (%p778_p6), %s278_s16, 4294967168  ;;  %p320_p11 = scmp.lt.s32.totalorder %s756_s28, 1  ;;  %v691_v0 = vmov 0   ;;  %v330_v3 = vld [vmem:[%s935_s3] sm:$0xff]  ;;  %s692_s16 = smov 112   ;;  %v340_v6 = vlaneseq  ;;  %vm360_vm2 = vcmask 130048  }
  0x38   : > { %589 = vset.pattern.permute.xlu0 %v691_v0  ;;  %v331_v10 = vld [vmem:[%s936_s4] sm:$0x3]  ;;  %s693_s15 = smov 16   ;;  %s319_s19 = scalar_lea.vmem [#allocation5], %s530_s11  ;;  %vm414_vm3 = vcmask 261248  }
  0x39   : > { %s321_s20 = scalar_select %p320_p11, %s756_s28, 1  ;;  %v341_v7 = vshrl.u32 %v340_v6, 7  ;;  %v329_v18 = vld [vmem:[%s846_s23] sm:$0xff] }
  0x3a   : > { %v535_v33 = vld [vmem:[%s938_s6] ss:$0 sm:$0xff]  ;;  %s430_s12 = sshll.u32 %s319_s19, 4  ;;  %s417_s29 = scalar_lea.sflag [#allocation4], %s840_s8  ;;  %s890_s12 = int_to_ptr.vmem [resolvable:$true] %s430_s12 }
  0x3b   : > { %s532_s22 = sshll.u32 %s321_s20, 3  ;;  %v342_v8 = vsub.s32 0, %v341_v7  ;;  %v346_v9 = vsub.s32 1, %v341_v7  ;;  %v534_v34 = vld [vmem:[%s937_s5] ss:$0 sm:$0xff]  ;;  %s622_s23 = scalar_lea.vmem %s890_s12, 128 }
  0x3c   : > { %s327_s18 = scalar_lea.vmem %s934_s2, %s532_s22  ;;  %s323_s21 = scalar_lea.vmem %s932_s0, %s532_s22 }
  0x3d   : > { %v332_v1 = vld [vmem:[%s327_s18] sm:$0xff]  ;;  %v343_v11 = vrot.slane %v331_v10, %v342_v8  ;;  %v347_v12 = vrot.slane %v331_v10, %v346_v9  ;;  %p623_p6 = scmp.ne.s32.totalorder %s890_s12, %s622_s23  ;;  %p948_p12 = scmp.ne.s32.totalorder %s943_s13, 0 }
  0x3e   : > { %vm334_vm0 = vcmp.eq.s32.totalorder %v332_v1, 0  ;;  %v328_v4 = vld [vmem:[%s323_s21] sm:$0xff]  ;;  %s537_s21 = sshll.u32 %s756_s28, 7  ;;  %s694_s28 = smov [#allocation5]  }
  0x3f   : > { %v335_v2 = vsel %vm334_vm0, 1, %v691_v0  ;;  %v333_v5 = vadd.f32 %v330_v3, %v328_v4  ;;  %s888_s20 = scalar_lea.hbm %s939_s7, %s537_s21  ;;  %p624_p13 = pnand %p623_p6, %p948_p12 }
  0x40   : > { %337 = vperm.xlu0 %589, %v335_v2   ;;  %s626_s11 = sshll.u32 %s694_s28, 4  ;;  %s627_s11 = int_to_ptr.vmem [resolvable:$false] %s626_s11 }
  0x41   : > { %p625_p7 = pneg %p624_p13  ;;  %s628_s22 = scalar_lea.vmem %s627_s11, 256 }
  0x42   : > { %p629_p10 = scmp.lt.s32.totalorder %s890_s12, %s627_s11  ;;  %p630_p2 = scmp.lt.s32.totalorder %s628_s22, %s622_s23 }
  0x44   : > { %351 = vrot.lane.b32.xlu0 %v330_v3, %s692_s16  ;;  %p631_p4 = por %p630_p2, %p629_p10 }
  0x46   : > { %p632_p5 = pnand %p631_p4, %p625_p7 }
  0xbf   : > { %v338_v13 = vpop.permute.xlu0 %337 }
  0xc0   : > { %vm339_vm1 = vcmp.eq.s32.totalorder %v338_v13, 1 }
  0xc1   : > { %v348_v14 = vsel %vm339_vm1, %v343_v11, %v347_v12 }
  0xc2   : > { %356 = vrot.lane.b32.xlu1 %v348_v14, %s692_s16  ;;  %v349_v15 = vadd.f32 %v348_v14, %v333_v5 }
  0xc3   : > { %v352_v17 = vpop.permute.xlu0 %351 }
  0xc4   : > { %v361_v16 = vsel %vm360_vm2, %v349_v15, 0.0  ;;  %v354_v19 = vadd.f32 %v352_v17, %v329_v18 }
  0xe6   : > { %362 = vadd.xlane.f32.xlu1 %v361_v16 }
 0x134   : > { %v357_v20 = vpop.permute.xlu1 %356 }
 0x135   : > { %v359_v21 = vadd.f32 %v357_v20, %v354_v19 }
 0x137   : > { %v364_v22 = vsel %vm360_vm2, %v359_v21, 0.0 }
 0x138   : > { %365 = vadd.xlane.f32.xlu0 %v364_v22 }
 0x173   : > { %v363_v23 = vpop.xlane.xlu1 %362 }
 0x1c5   : > { %v366_v24 = vpop.xlane.xlu0 %365 }
 0x1c6   : > { %v367_v25 = vadd.f32 %v366_v24, %v363_v23 }
 0x1c8   : > { %v368_v26 = vmul.f32 0.03125, %v367_v25 }
 0x1ca   : > { %v369_v27 = vsub.f32 %v349_v15, %v368_v26  ;;  %v370_v28 = vsub.f32 %v359_v21, %v368_v26 }
 0x1cc   : > { %v375_v29 = vmul.f32 %v370_v28, %v370_v28  ;;  %v371_v30 = vmul.f32 %v369_v27, %v369_v27 }
 0x1ce   : > { %v376_v31 = vsel %vm360_vm2, %v375_v29, 0.0  ;;  %v372_v32 = vsel %vm360_vm2, %v371_v30, 0.0 }
 0x1cf   : > { %377 = vadd.xlane.f32.xlu1 %v376_v31  ;;  %373 = vadd.xlane.f32.xlu0 %v372_v32 }
 0x1e0   : > { %406 = vrot.lane.b32.xlu1 %v535_v33, %s692_s16 }
 0x1e5   : > { %402 = vrot.lane.b32.xlu0 %v534_v34, %s692_s16 }
 0x25c   : > { %v378_v35 = vpop.xlane.xlu1 %377  ;;  %v374_v36 = vpop.xlane.xlu0 %373 }
 0x25d   : > { %v379_v37 = vadd.f32 %v378_v35, %v374_v36 }
 0x25f   : > { %v380_v38 = vmul.f32 0.03125, %v379_v37 }
 0x260   : > { %v403_v41 = vpop.permute.xlu0 %402  ;;  %v407_v44 = vpop.permute.xlu1 %406 }
 0x261   : > { %v381_v39 = vadd.f32 1e-12, %v380_v38 }
 0x263   : > { %590 = vrsqrt.f32 %v381_v39 }
 0x26d   : > { %v591_v40 = vpop.eup %590 }
 0x26e   : > { %v385_v42 = vmul.f32 %v591_v40, %v369_v27  ;;  %v401_v43 = vmul.f32 %v591_v40, %v370_v28 }
 0x270   : > { %v392_v45 = vmul.f32 %v534_v34, %v385_v42  ;;  %v405_v46 = vmul.f32 %v403_v41, %v401_v43 }
 0x272   : > { %v399_v47 = vadd.f32 %v535_v33, %v392_v45  ;;  %v409_v48 = vadd.f32 %v407_v44, %v405_v46 }
 0x274   : > { %411 = vrot.lane.b32.xlu1 %v409_v48, %s693_s15  ;;  %400 = vst.msk [vmem:[%s319_s19] sm:$0xff] %vm360_vm2, %v399_v47 }
 0x2e6   : > { %v412_v49 = vpop.permute.xlu1 %411 }
 0x2e7   : > { %415 = vst.msk [vmem:[%s319_s19] sm:$0xff] %vm414_vm3, %v412_v49 }
 0x2e8   : > { %635 = shalt.err (!%p632_p5)
}
 0x2e9   : > { %s636_s8 = scalar_lea.hbm %s888_s20, 128  ;;  %s640_s15 = scalar_lea.hbm %s939_s7, 256 }
 0x2ea   : > { %p637_p8 = scmp.ne.s32.totalorder %s888_s20, %s636_s8  ;;  %p641_p1 = scmp.lt.u32.totalorder %s888_s20, %s939_s7 }
 0x2eb   : > { %p642_p3 = scmp.lt.u32.totalorder %s640_s15, %s636_s8  ;;  %p644_p6 = scmp.lt.u32.totalorder %s636_s8, %s888_s20 }
 0x2ec   : > { %p638_p9 = pnand %p637_p8, %p948_p12 }
 0x2ed   : > { %p643_p11 = por %p642_p3, %p641_p1 }
 0x2ee   : > { %p639_p0 = pneg %p638_p9 }
 0x2ef   : > { %p645_p13 = por %p644_p6, %p643_p11 }
 0x2f1   : > { %p646_p7 = pnand %p645_p13, %p639_p0 }
 0x2f3   : > { %649 = shalt.err (!%p646_p7)
}
 0x2f4   : > { %542 = dma.vmem_to_hbm [thread:$0]  (%p948_p12), %s890_s12, 128, %s888_s20, %s417_s29  }
 0x2f5 PF: > { %s442_s9 = sand.u32 1, %s676_s24   ;;  %p949_p10 = scmp.ne.s32.totalorder %s944_s14, 0 }
 0x2f6   : > { %p950_p2 = scmp.ge.s32.totalorder %s688_s27, 2  ;;  %s443_s16 = scalar_lea.sflag [#allocation4], %s442_s9 }
 0x2f8   : > { %p549_p4 = pnand %p950_p2, %p949_p10 }
 0x2fa   : > { %671 = dma.done.wait (!%p549_p4), %s443_s16, 128  }
 0x2fb   : > { %673 = vsyncadd (!%p549_p4), %s443_s16, 4294967168  ;;  %p20_p5 = scmp.ge.s32.totalorder %s760_s30, 4   ;;  %s951_s24 = smov %s680_s25 }
 0x2fc   : > { %s952_s25 = smov %s684_s26  ;;  %s953_s26 = smov %s772_s10 }
 0x2fd   : > { %s954_s27 = smov %s760_s30  ;;  %22 = sbr.rel (!%p20_p5) target bundleno = 5 (0x5), region = 99 }
 0x304   :  { %448 = vsyncpa [#allocation3], 1 }
 0x305   :  { %450 = vsyncpa [#allocation3 + $0x1], 1 }
 0x306   :  { %451 = vsyncpa [#allocation4], 1 }
 0x307   :  { %453 = vsyncpa [#allocation4 + $0x1], 1 }

</bundles_post_ra>
